<compile_context>
chip_gen: v6e
topology: v6e:2x2x1
jax: 0.10.0
libtpu: 0.0.40
codegen_flags: <defaults>
</compile_context>

<pallas_src>
import functools

import jax
import jax.numpy as jnp
from jax.experimental import pallas as pl
from jax.experimental.pallas import tpu as pltpu

_LANE = 128          # vreg lane width
_BF16_SUBLANE = 16   # bf16 sublane tile


def _round_up(x, m):
    return ((x + m - 1) // m) * m


def _pad2(x, rows, cols):
    return jnp.pad(x, ((0, rows - x.shape[0]), (0, cols - x.shape[1])))


def _pick_col_tile(n_pad):
    # Largest 128-multiple tile (<=512) dividing n_pad.  Keeps the
    # double-buffered A_hat stream small (v7x: 2*tn*n_pad*2B must stay well
    # under the 64 MiB/TC VMEM) while staying above the tile size where
    # per-grid-step overhead starts eating the HBM roofline.
    for t in (512, 256, 128):
        if n_pad % t == 0:
            return t
    return 128


def _vmem_limit_bytes(n_pad, tn, f_pad, h_pad, g_pad, o_rows, n_tiles):
    bf, f4 = 2, 4
    need = 0
    need += 2 * n_pad * tn * bf            # A_hat column tiles (double buffered)
    need += 2 * tn * g_pad * bf            # P^T row tiles (double buffered)
    need += 2 * 1 * tn * f4                # dinv tiles
    need += 1 * n_pad * f4                 # dinv (full)
    need += f_pad * n_pad * bf             # X^T
    need += (h_pad * f_pad + 2 * h_pad * h_pad + o_rows * h_pad) * bf  # weights
    need += (3 * h_pad + o_rows) * f4      # biases
    need += h_pad * n_pad * bf             # M1 scratch
    need += n_tiles * h_pad * tn * bf      # M2 tile scratch
    need += h_pad * g_pad * f4             # pooled scratch
    need += 2 * o_rows * g_pad * f4        # output block
    # 50% headroom + 4 MiB for compiler-internal scratch; cap below the
    # physical 64 MiB of a v7x TensorCore.
    return int(min(max(need * 3 // 2 + (4 << 20), 8 << 20), 48 << 20))


# ---------------------------------------------------------------------------
# Fused Pallas kernel (transposed layout, 2-phase adjacency streaming)
# ---------------------------------------------------------------------------
def _fused_net_kernel(dinv_full_ref, dinv_t_ref, xt_ref,
                      w1t_ref, b1_ref, w2t_ref, b2_ref,
                      fw1t_ref, fb1_ref, fw2t_ref, fb2_ref,
                      a_ref, pt_ref,
                      o_ref,
                      m1_sc, m2_sc, pool_sc):
    f32 = jnp.float32
    bf16 = jnp.bfloat16

    phase = pl.program_id(0)
    j = pl.program_id(1)
    last_j = pl.num_programs(1) - 1

    n_tiles, h_pad, tn = m2_sc.shape
    dinv_t = dinv_t_ref[...]                       # [1, tn]  f32

    # ---- phase 0, first tile: M1 = (W1^T @ X^T) * dinv (full, resident) ----
    @pl.when((phase == 0) & (j == 0))
    def _():
        m1 = jnp.dot(w1t_ref[...], xt_ref[...], preferred_element_type=f32)
        m1_sc[...] = (m1 * dinv_full_ref[...]).astype(bf16)

    # ---- phase 0: conv1 column tile, then pre-build conv2 operand tile ----
    @pl.when(phase == 0)
    def _():
        acc = jnp.dot(m1_sc[...], a_ref[...], preferred_element_type=f32)
        h1 = jnp.maximum(acc * dinv_t + b1_ref[...], 0.0)          # [h, tn]
        m2 = jnp.dot(w2t_ref[...], h1.astype(bf16), preferred_element_type=f32)
        m2_sc[j] = (m2 * dinv_t).astype(bf16)

    # ---- phase 1: conv2 column tile + pooled accumulation ----
    @pl.when((phase == 1) & (j == 0))
    def _():
        pool_sc[...] = jnp.zeros_like(pool_sc)

    @pl.when(phase == 1)
    def _():
        acc = jnp.zeros((h_pad, tn), f32)
        for t in range(n_tiles):                    # static, unrolled contraction
            acc = acc + jnp.dot(m2_sc[t], a_ref[t * tn:(t + 1) * tn, :],
                                preferred_element_type=f32)
        h2 = jnp.maximum(acc * dinv_t + b2_ref[...], 0.0)          # [h, tn]
        pool_sc[...] += jnp.dot(h2.astype(bf16), pt_ref[...],
                                preferred_element_type=f32)

    # ---- last step: fc1 -> relu -> fc2, lane-dense output ----
    @pl.when((phase == 1) & (j == last_j))
    def _():
        g = jnp.dot(fw1t_ref[...], pool_sc[...].astype(bf16),
                    preferred_element_type=f32)
        g = jnp.maximum(g + fb1_ref[...], 0.0)
        out = jnp.dot(fw2t_ref[...], g.astype(bf16), preferred_element_type=f32)
        o_ref[...] = (out + fb2_ref[...]).astype(o_ref.dtype)


# ---------------------------------------------------------------------------
# Hoisted, cacheable preprocessing (per review: do padding / casting once)
# ---------------------------------------------------------------------------
def init_params(key, num_features, hidden):
    ks = jax.random.split(key, 4)

    def glorot(k, fan_in, fan_out):
        scale = jnp.sqrt(6.0 / (fan_in + fan_out))
        return jax.random.uniform(k, (fan_in, fan_out), jnp.float32, -scale, scale)

    return {
        "conv1_w": glorot(ks[0], num_features, hidden),
        "conv1_b": jnp.zeros((hidden,), jnp.float32),
        "conv2_w": glorot(ks[1], hidden, hidden),
        "conv2_b": jnp.zeros((hidden,), jnp.float32),
        "fc1_w": glorot(ks[2], hidden, hidden),
        "fc1_b": jnp.zeros((hidden,), jnp.float32),
        "fc2_w": glorot(ks[3], hidden, 1),
        "fc2_b": jnp.zeros((1,), jnp.float32),
    }


def prepare_params(params):
    """Pad + transpose + bf16-cast the weights once (hoisted out of forward)."""
    num_features, hidden = params["conv1_w"].shape
    f_pad = _round_up(max(num_features, 1), _BF16_SUBLANE)
    h_pad = _round_up(hidden, _BF16_SUBLANE)
    o_rows = _BF16_SUBLANE
    bf16 = jnp.bfloat16
    f32 = jnp.float32
    return {
        "w1t": _pad2(params["conv1_w"].T, h_pad, f_pad).astype(bf16),
        "b1": _pad2(params["conv1_b"].reshape(-1, 1), h_pad, 1).astype(f32),
        "w2t": _pad2(params["conv2_w"].T, h_pad, h_pad).astype(bf16),
        "b2": _pad2(params["conv2_b"].reshape(-1, 1), h_pad, 1).astype(f32),
        "fw1t": _pad2(params["fc1_w"].T, h_pad, h_pad).astype(bf16),
        "fb1": _pad2(params["fc1_b"].reshape(-1, 1), h_pad, 1).astype(f32),
        "fw2t": _pad2(params["fc2_w"].T, o_rows, h_pad).astype(bf16),
        "fb2": _pad2(params["fc2_b"].reshape(-1, 1), o_rows, 1).astype(f32),
    }


def prepare_graph(edge_index, batch, num_nodes, num_graphs):
    """Build (A+I) [exact in bf16], f32 D^{-1/2} and the pooling matrix P^T.

    edge_index is assumed to contain both directions for undirected graphs
    (PyG convention).  Duplicate edges accumulate, matching GCNConv.
    Cache the result when the graph / batch is static across calls.
    """
    n_pad = _round_up(max(num_nodes, 1), _LANE)
    g_pad = _round_up(max(num_graphs, 1), _LANE)
    src, dst = edge_index
    a = jnp.zeros((num_nodes, num_nodes), jnp.float32).at[src, dst].add(1.0)
    a = a + jnp.eye(num_nodes, dtype=jnp.float32)            # self-loops
    deg = jnp.sum(a, axis=1)
    dinv = jnp.where(deg > 0, jax.lax.rsqrt(deg), 0.0)
    a_hat = _pad2(a, n_pad, n_pad).astype(jnp.bfloat16)       # exact small ints
    dinv_p = jnp.pad(dinv, (0, n_pad - num_nodes)).reshape(1, n_pad)
    pt = (batch[:, None] == jnp.arange(num_graphs)[None, :]).astype(jnp.float32)
    pt = _pad2(pt, n_pad, g_pad).astype(jnp.bfloat16)         # exact 0/1
    return {"a_hat": a_hat, "dinv": dinv_p.astype(jnp.float32), "pt": pt}


# ---------------------------------------------------------------------------
# Forward pass
# ---------------------------------------------------------------------------
@functools.partial(jax.jit, static_argnames=("num_graphs",))
def net_forward(prep, graph, x, *, num_graphs):
    a_hat, dinv, pt = graph["a_hat"], graph["dinv"], graph["pt"]
    n_pad = a_hat.shape[0]
    g_pad = pt.shape[1]
    h_pad, f_pad = prep["w1t"].shape
    o_rows = prep["fw2t"].shape[0]

    xt = _pad2(x.T, f_pad, n_pad).astype(jnp.bfloat16)        # [f_pad, n_pad]

    tn = _pick_col_tile(n_pad)
    n_tiles = n_pad // tn
    grid = (2, n_tiles)                                       # (phase, A column tile)

    def _full_spec(shape):
        return pl.BlockSpec(shape, lambda p, j: (0,) * len(shape))

    in_specs = [
        _full_spec((1, n_pad)),                               # dinv (full)
        pl.BlockSpec((1, tn), lambda p, j: (0, j)),           # dinv column tile
        _full_spec((f_pad, n_pad)),                           # X^T
        _full_spec((h_pad, f_pad)), _full_spec((h_pad, 1)),   # W1^T, b1
        _full_spec((h_pad, h_pad)), _full_spec((h_pad, 1)),   # W2^T, b2
        _full_spec((h_pad, h_pad)), _full_spec((h_pad, 1)),   # FW1^T, fb1
        _full_spec((o_rows, h_pad)), _full_spec((o_rows, 1)), # FW2^T, fb2
        pl.BlockSpec((n_pad, tn), lambda p, j: (0, j)),       # A_hat column tile
        pl.BlockSpec((tn, g_pad), lambda p, j: (p * j, 0)),   # P^T row tile (phase 1)
    ]
    out_specs = pl.BlockSpec((o_rows, g_pad), lambda p, j: (0, 0))
    scratch_shapes = [
        pltpu.VMEM((h_pad, n_pad), jnp.bfloat16),             # M1 (conv1 operand)
        pltpu.VMEM((n_tiles, h_pad, tn), jnp.bfloat16),       # M2 tiles (conv2 operand)
        pltpu.VMEM((h_pad, g_pad), jnp.float32),              # pooled accumulator
    ]

    out_t = pl.pallas_call(
        _fused_net_kernel,
        out_shape=jax.ShapeDtypeStruct((o_rows, g_pad), jnp.float32),
        grid_spec=pltpu.PrefetchScalarGridSpec(
            num_scalar_prefetch=0,
            grid=grid,
            in_specs=in_specs,
            out_specs=out_specs,
            scratch_shapes=scratch_shapes),
        compiler_params=pltpu.CompilerParams(
            # Both axes "arbitrary": phase 1 consumes per-core VMEM scratch
            # written in phase 0, so neither axis may be sharded across cores.
            dimension_semantics=("arbitrary", "arbitrary"),
            vmem_limit_bytes=_vmem_limit_bytes(
                n_pad, tn, f_pad, h_pad, g_pad, o_rows, n_tiles)),
    )(dinv, dinv, xt,
      prep["w1t"], prep["b1"], prep["w2t"], prep["b2"],
      prep["fw1t"], prep["fb1"], prep["fw2t"], prep["fb2"],
      a_hat, pt)

    return out_t[:1, :num_graphs].T                           # [num_graphs, 1]


def net_forward_reference(params, x, edge_index, batch, num_graphs):
    """Pure f32 JAX reference of the same forward pass (for validation)."""
    n = x.shape[0]
    src, dst = edge_index
    a = jnp.zeros((n, n), jnp.float32).at[src, dst].add(1.0) + jnp.eye(n)
    deg = jnp.sum(a, axis=1)
    dinv = jnp.where(deg > 0, jax.lax.rsqrt(deg), 0.0)
    a_hat = dinv[:, None] * a * dinv[None, :]
    pool = (batch[None, :] == jnp.arange(num_graphs)[:, None]).astype(jnp.float32)
    h = jax.nn.relu(a_hat @ (x @ params["conv1_w"]) + params["conv1_b"])
    h = jax.nn.relu(a_hat @ (h @ params["conv2_w"]) + params["conv2_b"])
    g = pool @ h
    g = jax.nn.relu(g @ params["fc1_w"] + params["fc1_b"])
    return g @ params["fc2_w"] + params["fc2_b"]


# ---------------------------------------------------------------------------
if __name__ == "__main__":
    num_features = 4
    hidden = 32
    num_nodes = 8
    num_graphs = 2

    key = jax.random.PRNGKey(0)
    k_x, k_p = jax.random.split(key)

    # Node features [N, F]
    x = jax.random.normal(k_x, (num_nodes, num_features), jnp.float32)

    # Two small graphs: nodes 0-3 (graph 0) and 4-7 (graph 1), undirected edges
    src = jnp.array([0, 1, 1, 2, 2, 3, 4, 5, 5, 6, 6, 7], dtype=jnp.int32)
    dst = jnp.array([1, 0, 2, 1, 3, 2, 5, 4, 6, 5, 7, 6], dtype=jnp.int32)
    edge_index = jnp.stack([src, dst], axis=0)      # [2, E]
    batch = jnp.array([0, 0, 0, 0, 1, 1, 1, 1], dtype=jnp.int32)

    params = init_params(k_p, num_features, hidden)

    prep = prepare_params(params)                               # hoisted, once
    graph = prepare_graph(edge_index, batch, num_nodes, num_graphs)  # cacheable

    out = net_forward(prep, graph, x, num_graphs=num_graphs)
    out = jax.block_until_ready(out)
    assert out.shape == (num_graphs, 1)

    ref = net_forward_reference(params, x, edge_index, batch, num_graphs)
    if not bool(jnp.allclose(out, ref, rtol=5e-2, atol=5e-2)):
        raise AssertionError(f"kernel/reference mismatch:\n{out}\nvs\n{ref}")

    print("KERNEL_OK")
</pallas_src>

<mosaic_0001>
module attributes {stable_mosaic.version = 11 : i64} {
  func.func @_fused_net_kernel(%arg0: i32, %arg1: i32, %arg2: memref<1x128xf32, #tpu.memory_space<vmem>>, %arg3: memref<1x128xf32, #tpu.memory_space<vmem>>, %arg4: memref<16x128xbf16, #tpu.memory_space<vmem>>, %arg5: memref<32x16xbf16, #tpu.memory_space<vmem>>, %arg6: memref<32x1xf32, #tpu.memory_space<vmem>>, %arg7: memref<32x32xbf16, #tpu.memory_space<vmem>>, %arg8: memref<32x1xf32, #tpu.memory_space<vmem>>, %arg9: memref<32x32xbf16, #tpu.memory_space<vmem>>, %arg10: memref<32x1xf32, #tpu.memory_space<vmem>>, %arg11: memref<16x32xbf16, #tpu.memory_space<vmem>>, %arg12: memref<16x1xf32, #tpu.memory_space<vmem>>, %arg13: memref<128x128xbf16, #tpu.memory_space<vmem>>, %arg14: memref<128x128xbf16, #tpu.memory_space<vmem>>, %arg15: memref<16x128xf32, #tpu.memory_space<vmem>>, %arg16: memref<32x128xbf16, #tpu.memory_space<vmem>>, %arg17: memref<1x32x128xbf16, #tpu.memory_space<vmem>>, %arg18: memref<32x128xf32, #tpu.memory_space<vmem>>) attributes {dimension_semantics = [#tpu.dimension_semantics<arbitrary>, #tpu.dimension_semantics<arbitrary>], iteration_bounds = array<i64: 2, 1>, scalar_prefetch = 0 : i64, scratch_operands = 3 : i64, tpu.core_type = #tpu.core_type<tc>, window_params = [{pipeline_mode = #tpu.pipeline_mode<synchronous>, transform_indices = @transform_0, window_bounds = array<i64: 1, 128>}, {transform_indices = @transform_1, window_bounds = array<i64: 1, 128>}, {pipeline_mode = #tpu.pipeline_mode<synchronous>, transform_indices = @transform_2, window_bounds = array<i64: 16, 128>}, {pipeline_mode = #tpu.pipeline_mode<synchronous>, transform_indices = @transform_3, window_bounds = array<i64: 32, 16>}, {pipeline_mode = #tpu.pipeline_mode<synchronous>, transform_indices = @transform_4, window_bounds = array<i64: 32, 1>}, {pipeline_mode = #tpu.pipeline_mode<synchronous>, transform_indices = @transform_5, window_bounds = array<i64: 32, 32>}, {pipeline_mode = #tpu.pipeline_mode<synchronous>, transform_indices = @transform_6, window_bounds = array<i64: 32, 1>}, {pipeline_mode = #tpu.pipeline_mode<synchronous>, transform_indices = @transform_7, window_bounds = array<i64: 32, 32>}, {pipeline_mode = #tpu.pipeline_mode<synchronous>, transform_indices = @transform_8, window_bounds = array<i64: 32, 1>}, {pipeline_mode = #tpu.pipeline_mode<synchronous>, transform_indices = @transform_9, window_bounds = array<i64: 16, 32>}, {pipeline_mode = #tpu.pipeline_mode<synchronous>, transform_indices = @transform_10, window_bounds = array<i64: 16, 1>}, {transform_indices = @transform_11, window_bounds = array<i64: 128, 128>}, {transform_indices = @transform_12, window_bounds = array<i64: 128, 128>}, {pipeline_mode = #tpu.pipeline_mode<synchronous>, transform_indices = @transform_13, window_bounds = array<i64: 16, 128>}]} {
    %c0 = arith.constant 0 : index
    %c0_0 = arith.constant 0 : index
    %0 = vector.load %arg3[%c0, %c0_0] : memref<1x128xf32, #tpu.memory_space<vmem>>, vector<1x128xf32>
    %c0_i32 = arith.constant 0 : i32
    %1 = arith.cmpi eq, %arg0, %c0_i32 : i32
    %c0_i32_1 = arith.constant 0 : i32
    %2 = arith.cmpi eq, %arg1, %c0_i32_1 : i32
    %3 = arith.andi %1, %2 : i1
    %4 = arith.extui %3 : i1 to i32
    %c0_i32_2 = arith.constant 0 : i32
    %5 = arith.cmpi ne, %4, %c0_i32_2 : i32
    scf.if %5 {
      %c0_12 = arith.constant 0 : index
      %c0_13 = arith.constant 0 : index
      %22 = vector.load %arg5[%c0_12, %c0_13] : memref<32x16xbf16, #tpu.memory_space<vmem>>, vector<32x16xbf16>
      %c0_14 = arith.constant 0 : index
      %c0_15 = arith.constant 0 : index
      %23 = vector.load %arg4[%c0_14, %c0_15] : memref<16x128xbf16, #tpu.memory_space<vmem>>, vector<16x128xbf16>
      %cst = arith.constant dense<0.000000e+00> : vector<32x128xf32>
      %24 = tpu.matmul %22, %23, %cst {dimension_numbers = #tpu.dot_dimension_numbers<[1], [0], [0], [1], [0, 0, 1, 1], [], []>} : vector<32x16xbf16>, vector<16x128xbf16>, vector<32x128xf32> -> vector<32x128xf32>
      %c0_16 = arith.constant 0 : index
      %c0_17 = arith.constant 0 : index
      %25 = vector.load %arg2[%c0_16, %c0_17] : memref<1x128xf32, #tpu.memory_space<vmem>>, vector<1x128xf32>
      %26 = vector.broadcast %25 : vector<1x128xf32> to vector<32x128xf32>
      %27 = arith.mulf %24, %26 : vector<32x128xf32>
      %28 = arith.truncf %27 : vector<32x128xf32> to vector<32x128xbf16>
      %c0_18 = arith.constant 0 : index
      %c0_19 = arith.constant 0 : index
      %29 = vector.load %arg16[%c0_18, %c0_19] : memref<32x128xbf16, #tpu.memory_space<vmem>>, vector<32x128xbf16>
      tpu.vector_store %arg16[%c0_18, %c0_19], %28 {strides = array<i32>} : memref<32x128xbf16, #tpu.memory_space<vmem>>, vector<32x128xbf16>,
    } else {
    }
    %c0_i32_3 = arith.constant 0 : i32
    %6 = arith.cmpi eq, %arg0, %c0_i32_3 : i32
    %7 = arith.extui %6 : i1 to i32
    %c0_i32_4 = arith.constant 0 : i32
    %8 = arith.cmpi ne, %7, %c0_i32_4 : i32
    scf.if %8 {
      %c0_12 = arith.constant 0 : index
      %c0_13 = arith.constant 0 : index
      %22 = vector.load %arg16[%c0_12, %c0_13] : memref<32x128xbf16, #tpu.memory_space<vmem>>, vector<32x128xbf16>
      %c0_14 = arith.constant 0 : index
      %c0_15 = arith.constant 0 : index
      %23 = vector.load %arg13[%c0_14, %c0_15] : memref<128x128xbf16, #tpu.memory_space<vmem>>, vector<128x128xbf16>
      %cst = arith.constant dense<0.000000e+00> : vector<32x128xf32>
      %24 = tpu.matmul %22, %23, %cst {dimension_numbers = #tpu.dot_dimension_numbers<[1], [0], [0], [1], [0, 0, 1, 1], [], []>} : vector<32x128xbf16>, vector<128x128xbf16>, vector<32x128xf32> -> vector<32x128xf32>
      %25 = vector.broadcast %0 : vector<1x128xf32> to vector<32x128xf32>
      %26 = arith.mulf %24, %25 : vector<32x128xf32>
      %c0_16 = arith.constant 0 : index
      %c0_17 = arith.constant 0 : index
      %27 = vector.load %arg6[%c0_16, %c0_17] : memref<32x1xf32, #tpu.memory_space<vmem>>, vector<32x1xf32>
      %28 = vector.broadcast %27 : vector<32x1xf32> to vector<32x128xf32>
      %29 = arith.addf %26, %28 : vector<32x128xf32>
      %cst_18 = arith.constant 0.000000e+00 : f32
      %30 = vector.broadcast %cst_18 : f32 to vector<32x128xf32>
      %31 = arith.maximumf %29, %30 : vector<32x128xf32>
      %c0_19 = arith.constant 0 : index
      %c0_20 = arith.constant 0 : index
      %32 = vector.load %arg7[%c0_19, %c0_20] : memref<32x32xbf16, #tpu.memory_space<vmem>>, vector<32x32xbf16>
      %33 = arith.truncf %31 : vector<32x128xf32> to vector<32x128xbf16>
      %cst_21 = arith.constant dense<0.000000e+00> : vector<32x128xf32>
      %34 = tpu.matmul %32, %33, %cst_21 {dimension_numbers = #tpu.dot_dimension_numbers<[1], [0], [0], [1], [0, 0, 1, 1], [], []>} : vector<32x32xbf16>, vector<32x128xbf16>, vector<32x128xf32> -> vector<32x128xf32>
      %35 = vector.broadcast %0 : vector<1x128xf32> to vector<32x128xf32>
      %36 = arith.mulf %34, %35 : vector<32x128xf32>
      %37 = arith.truncf %36 : vector<32x128xf32> to vector<32x128xbf16>
      %38 = arith.index_cast %arg1 : i32 to index
      %c0_22 = arith.constant 0 : index
      %c0_23 = arith.constant 0 : index
      %39 = vector.load %arg17[%38, %c0_22, %c0_23] : memref<1x32x128xbf16, #tpu.memory_space<vmem>>, vector<1x32x128xbf16>
      %40 = vector.shape_cast %39 : vector<1x32x128xbf16> to vector<32x128xbf16>
      %41 = vector.shape_cast %37 : vector<32x128xbf16> to vector<1x32x128xbf16>
      tpu.vector_store %arg17[%38, %c0_22, %c0_23], %41 {strides = array<i32>} : memref<1x32x128xbf16, #tpu.memory_space<vmem>>, vector<1x32x128xbf16>,
    } else {
    }
    %c1_i32 = arith.constant 1 : i32
    %9 = arith.cmpi eq, %arg0, %c1_i32 : i32
    %c0_i32_5 = arith.constant 0 : i32
    %10 = arith.cmpi eq, %arg1, %c0_i32_5 : i32
    %11 = arith.andi %9, %10 : i1
    %12 = arith.extui %11 : i1 to i32
    %c0_i32_6 = arith.constant 0 : i32
    %13 = arith.cmpi ne, %12, %c0_i32_6 : i32
    scf.if %13 {
      %cst = arith.constant 0.000000e+00 : f32
      %22 = vector.broadcast %cst : f32 to vector<32x128xf32>
      %c0_12 = arith.constant 0 : index
      %c0_13 = arith.constant 0 : index
      %23 = vector.load %arg18[%c0_12, %c0_13] : memref<32x128xf32, #tpu.memory_space<vmem>>, vector<32x128xf32>
      tpu.vector_store %arg18[%c0_12, %c0_13], %22 {strides = array<i32>} : memref<32x128xf32, #tpu.memory_space<vmem>>, vector<32x128xf32>,
    } else {
    }
    %c1_i32_7 = arith.constant 1 : i32
    %14 = arith.cmpi eq, %arg0, %c1_i32_7 : i32
    %15 = arith.extui %14 : i1 to i32
    %c0_i32_8 = arith.constant 0 : i32
    %16 = arith.cmpi ne, %15, %c0_i32_8 : i32
    scf.if %16 {
      %cst = arith.constant 0.000000e+00 : f32
      %22 = vector.broadcast %cst : f32 to vector<32x128xf32>
      %c0_12 = arith.constant 0 : index
      %c0_13 = arith.constant 0 : index
      %c0_14 = arith.constant 0 : index
      %23 = vector.load %arg17[%c0_12, %c0_13, %c0_14] : memref<1x32x128xbf16, #tpu.memory_space<vmem>>, vector<1x32x128xbf16>
      %24 = vector.shape_cast %23 : vector<1x32x128xbf16> to vector<32x128xbf16>
      %c0_15 = arith.constant 0 : index
      %c0_16 = arith.constant 0 : index
      %25 = vector.load %arg13[%c0_15, %c0_16] : memref<128x128xbf16, #tpu.memory_space<vmem>>, vector<128x128xbf16>
      %cst_17 = arith.constant dense<0.000000e+00> : vector<32x128xf32>
      %26 = tpu.matmul %24, %25, %cst_17 {dimension_numbers = #tpu.dot_dimension_numbers<[1], [0], [0], [1], [0, 0, 1, 1], [], []>} : vector<32x128xbf16>, vector<128x128xbf16>, vector<32x128xf32> -> vector<32x128xf32>
      %27 = arith.addf %22, %26 : vector<32x128xf32>
      %28 = vector.broadcast %0 : vector<1x128xf32> to vector<32x128xf32>
      %29 = arith.mulf %27, %28 : vector<32x128xf32>
      %c0_18 = arith.constant 0 : index
      %c0_19 = arith.constant 0 : index
      %30 = vector.load %arg8[%c0_18, %c0_19] : memref<32x1xf32, #tpu.memory_space<vmem>>, vector<32x1xf32>
      %31 = vector.broadcast %30 : vector<32x1xf32> to vector<32x128xf32>
      %32 = arith.addf %29, %31 : vector<32x128xf32>
      %cst_20 = arith.constant 0.000000e+00 : f32
      %33 = vector.broadcast %cst_20 : f32 to vector<32x128xf32>
      %34 = arith.maximumf %32, %33 : vector<32x128xf32>
      %c0_21 = arith.constant 0 : index
      %c0_22 = arith.constant 0 : index
      %35 = vector.load %arg18[%c0_21, %c0_22] : memref<32x128xf32, #tpu.memory_space<vmem>>, vector<32x128xf32>
      %36 = arith.truncf %34 : vector<32x128xf32> to vector<32x128xbf16>
      %c0_23 = arith.constant 0 : index
      %c0_24 = arith.constant 0 : index
      %37 = vector.load %arg14[%c0_23, %c0_24] : memref<128x128xbf16, #tpu.memory_space<vmem>>, vector<128x128xbf16>
      %cst_25 = arith.constant dense<0.000000e+00> : vector<32x128xf32>
      %38 = tpu.matmul %36, %37, %cst_25 {dimension_numbers = #tpu.dot_dimension_numbers<[1], [0], [0], [1], [0, 0, 1, 1], [], []>} : vector<32x128xbf16>, vector<128x128xbf16>, vector<32x128xf32> -> vector<32x128xf32>
      %39 = arith.addf %35, %38 : vector<32x128xf32>
      %c0_26 = arith.constant 0 : index
      %c0_27 = arith.constant 0 : index
      %40 = vector.load %arg18[%c0_26, %c0_27] : memref<32x128xf32, #tpu.memory_space<vmem>>, vector<32x128xf32>
      tpu.vector_store %arg18[%c0_26, %c0_27], %39 {strides = array<i32>} : memref<32x128xf32, #tpu.memory_space<vmem>>, vector<32x128xf32>,
    } else {
    }
    %c1_i32_9 = arith.constant 1 : i32
    %17 = arith.cmpi eq, %arg0, %c1_i32_9 : i32
    %c0_i32_10 = arith.constant 0 : i32
    %18 = arith.cmpi eq, %arg1, %c0_i32_10 : i32
    %19 = arith.andi %17, %18 : i1
    %20 = arith.extui %19 : i1 to i32
    %c0_i32_11 = arith.constant 0 : i32
    %21 = arith.cmpi ne, %20, %c0_i32_11 : i32
    scf.if %21 {
      %c0_12 = arith.constant 0 : index
      %c0_13 = arith.constant 0 : index
      %22 = vector.load %arg9[%c0_12, %c0_13] : memref<32x32xbf16, #tpu.memory_space<vmem>>, vector<32x32xbf16>
      %c0_14 = arith.constant 0 : index
      %c0_15 = arith.constant 0 : index
      %23 = vector.load %arg18[%c0_14, %c0_15] : memref<32x128xf32, #tpu.memory_space<vmem>>, vector<32x128xf32>
      %24 = arith.truncf %23 : vector<32x128xf32> to vector<32x128xbf16>
      %cst = arith.constant dense<0.000000e+00> : vector<32x128xf32>
      %25 = tpu.matmul %22, %24, %cst {dimension_numbers = #tpu.dot_dimension_numbers<[1], [0], [0], [1], [0, 0, 1, 1], [], []>} : vector<32x32xbf16>, vector<32x128xbf16>, vector<32x128xf32> -> vector<32x128xf32>
      %c0_16 = arith.constant 0 : index
      %c0_17 = arith.constant 0 : index
      %26 = vector.load %arg10[%c0_16, %c0_17] : memref<32x1xf32, #tpu.memory_space<vmem>>, vector<32x1xf32>
      %27 = vector.broadcast %26 : vector<32x1xf32> to vector<32x128xf32>
      %28 = arith.addf %25, %27 : vector<32x128xf32>
      %cst_18 = arith.constant 0.000000e+00 : f32
      %29 = vector.broadcast %cst_18 : f32 to vector<32x128xf32>
      %30 = arith.maximumf %28, %29 : vector<32x128xf32>
      %c0_19 = arith.constant 0 : index
      %c0_20 = arith.constant 0 : index
      %31 = vector.load %arg11[%c0_19, %c0_20] : memref<16x32xbf16, #tpu.memory_space<vmem>>, vector<16x32xbf16>
      %32 = arith.truncf %30 : vector<32x128xf32> to vector<32x128xbf16>
      %cst_21 = arith.constant dense<0.000000e+00> : vector<16x128xf32>
      %33 = tpu.matmul %31, %32, %cst_21 {dimension_numbers = #tpu.dot_dimension_numbers<[1], [0], [0], [1], [0, 0, 1, 1], [], []>} : vector<16x32xbf16>, vector<32x128xbf16>, vector<16x128xf32> -> vector<16x128xf32>
      %c0_22 = arith.constant 0 : index
      %c0_23 = arith.constant 0 : index
      %34 = vector.load %arg12[%c0_22, %c0_23] : memref<16x1xf32, #tpu.memory_space<vmem>>, vector<16x1xf32>
      %35 = vector.broadcast %34 : vector<16x1xf32> to vector<16x128xf32>
      %36 = arith.addf %33, %35 : vector<16x128xf32>
      %c0_24 = arith.constant 0 : index
      %c0_25 = arith.constant 0 : index
      %37 = vector.load %arg15[%c0_24, %c0_25] : memref<16x128xf32, #tpu.memory_space<vmem>>, vector<16x128xf32>
      tpu.vector_store %arg15[%c0_24, %c0_25], %36 {strides = array<i32>} : memref<16x128xf32, #tpu.memory_space<vmem>>, vector<16x128xf32>,
    } else {
    }
    return
  }
  func.func @transform_0(%arg0: i32, %arg1: i32) -> (i32, i32) {
    %c0_i32 = arith.constant 0 : i32
    %c0_i32_0 = arith.constant 0 : i32
    %c0_i32_1 = arith.constant 0 : i32
    return %c0_i32, %c0_i32_0 : i32, i32
  }
  func.func @transform_1(%arg0: i32, %arg1: i32) -> (i32, i32) {
    %c0_i32 = arith.constant 0 : i32
    %c0_i32_0 = arith.constant 0 : i32
    return %c0_i32, %arg1 : i32, i32
  }
  func.func @transform_2(%arg0: i32, %arg1: i32) -> (i32, i32) {
    %c0_i32 = arith.constant 0 : i32
    %c0_i32_0 = arith.constant 0 : i32
    %c0_i32_1 = arith.constant 0 : i32
    return %c0_i32, %c0_i32_0 : i32, i32
  }
  func.func @transform_3(%arg0: i32, %arg1: i32) -> (i32, i32) {
    %c0_i32 = arith.constant 0 : i32
    %c0_i32_0 = arith.constant 0 : i32
    %c0_i32_1 = arith.constant 0 : i32
    return %c0_i32, %c0_i32_0 : i32, i32
  }
  func.func @transform_4(%arg0: i32, %arg1: i32) -> (i32, i32) {
    %c0_i32 = arith.constant 0 : i32
    %c0_i32_0 = arith.constant 0 : i32
    %c0_i32_1 = arith.constant 0 : i32
    return %c0_i32, %c0_i32_0 : i32, i32
  }
  func.func @transform_5(%arg0: i32, %arg1: i32) -> (i32, i32) {
    %c0_i32 = arith.constant 0 : i32
    %c0_i32_0 = arith.constant 0 : i32
    %c0_i32_1 = arith.constant 0 : i32
    return %c0_i32, %c0_i32_0 : i32, i32
  }
  func.func @transform_6(%arg0: i32, %arg1: i32) -> (i32, i32) {
    %c0_i32 = arith.constant 0 : i32
    %c0_i32_0 = arith.constant 0 : i32
    %c0_i32_1 = arith.constant 0 : i32
    return %c0_i32, %c0_i32_0 : i32, i32
  }
  func.func @transform_7(%arg0: i32, %arg1: i32) -> (i32, i32) {
    %c0_i32 = arith.constant 0 : i32
    %c0_i32_0 = arith.constant 0 : i32
    %c0_i32_1 = arith.constant 0 : i32
    return %c0_i32, %c0_i32_0 : i32, i32
  }
  func.func @transform_8(%arg0: i32, %arg1: i32) -> (i32, i32) {
    %c0_i32 = arith.constant 0 : i32
    %c0_i32_0 = arith.constant 0 : i32
    %c0_i32_1 = arith.constant 0 : i32
    return %c0_i32, %c0_i32_0 : i32, i32
  }
  func.func @transform_9(%arg0: i32, %arg1: i32) -> (i32, i32) {
    %c0_i32 = arith.constant 0 : i32
    %c0_i32_0 = arith.constant 0 : i32
    %c0_i32_1 = arith.constant 0 : i32
    return %c0_i32, %c0_i32_0 : i32, i32
  }
  func.func @transform_10(%arg0: i32, %arg1: i32) -> (i32, i32) {
    %c0_i32 = arith.constant 0 : i32
    %c0_i32_0 = arith.constant 0 : i32
    %c0_i32_1 = arith.constant 0 : i32
    return %c0_i32, %c0_i32_0 : i32, i32
  }
  func.func @transform_11(%arg0: i32, %arg1: i32) -> (i32, i32) {
    %c0_i32 = arith.constant 0 : i32
    %c0_i32_0 = arith.constant 0 : i32
    return %c0_i32, %arg1 : i32, i32
  }
  func.func @transform_12(%arg0: i32, %arg1: i32) -> (i32, i32) {
    %0 = arith.muli %arg0, %arg1 : i32
    %c0_i32 = arith.constant 0 : i32
    %c0_i32_0 = arith.constant 0 : i32
    return %0, %c0_i32 : i32, i32
  }
  func.func @transform_13(%arg0: i32, %arg1: i32) -> (i32, i32) {
    %c0_i32 = arith.constant 0 : i32
    %c0_i32_0 = arith.constant 0 : i32
    %c0_i32_1 = arith.constant 0 : i32
    return %c0_i32, %c0_i32_0 : i32, i32
  }
}

</mosaic_0001>

<bundles_post_ra>
// kernel: net_forward.1
= control target key start
LH: loop header
LB: loop body
LE: loop exit
PB: predicated region body
PF: predicated region fallthrough
CT: control target
= control target key end

     0   :  { %18 = vsyncpa [#allocation6], 0  ;;  %s1895_s25 = smov 0   ;;  %s1897_s26 = smov 0   ;;  %s2110_s0 = inlined_call_operand.vmem [shape: f32[1,128], index: 0, kind: input, shape index: {}, may-alias: {0,1}]   ;;  %s2111_s1 = inlined_call_operand.vmem [shape: f32[1,128], index: 1, kind: input, shape index: {}, may-alias: {0,1}]   ;;  %s2112_s2 = inlined_call_operand.vmem [shape: bf16[16,128], index: 2, kind: input, shape index: {}]   ;;  %s2113_s3 = inlined_call_operand.vmem [shape: bf16[32,16], index: 3, kind: input, shape index: {}]   ;;  %s2114_s4 = inlined_call_operand.vmem [shape: f32[32,1], index: 4, kind: input, shape index: {}]   ;;  %s2115_s5 = inlined_call_operand.vmem [shape: bf16[32,32], index: 5, kind: input, shape index: {}]   ;;  %s2116_s6 = inlined_call_operand.vmem [shape: f32[32,1], index: 6, kind: input, shape index: {}]   ;;  %s2117_s7 = inlined_call_operand.vmem [shape: bf16[32,32], index: 7, kind: input, shape index: {}]   ;;  %s2118_s8 = inlined_call_operand.vmem [shape: f32[32,1], index: 8, kind: input, shape index: {}]   ;;  %s2119_s9 = inlined_call_operand.hbm [shape: bf16[16,32], index: 9, kind: input, shape index: {}]   ;;  %s2120_s10 = inlined_call_operand.vmem [shape: f32[16,1], index: 10, kind: input, shape index: {}]   ;;  %s2121_s11 = inlined_call_operand.vmem [shape: bf16[128,128], index: 11, kind: input, shape index: {}]   ;;  %s2122_s12 = inlined_call_operand.vmem [shape: bf16[128,128], index: 12, kind: input, shape index: {}]   ;;  %s2123_s13 = inlined_call_operand.vmem [shape: f32[16,128], index: 13, kind: output, shape index: {}]  }
   0x1   :  { %s1899_s27 = smov 0  }
   0x2 LB: > { %s1444_s28 = sadd.s32 4294967295, %s1814_s27   ;;  %s36_s29 = sadd.s32 1, %s1810_s26  ;;  %s1814_s27 = sphi %s1899_s27, %s24_s27   ;;  %s1810_s26 = sphi %s1897_s26, %s2127_s26   ;;  %s1806_s25 = sphi %s1895_s25, %s2126_s25  }
   0x3   : > { %p38_p0 = scmp.ge.s32.totalorder %s36_s29, 2  ;;  %p1445_p1 = scmp.ge.s32.totalorder %s1814_s27, 1 }
   0x4   : > { %p352_p2 = scmp.lt.s32.totalorder %s1814_s27, 3  ;;  %p1920_p4 = scmp.eq.s32.totalorder %s1444_s28, 0 }
   0x5   : > { %s2129_s29 = smov (%p38_p0, %s36_s29), 0  ;;  %s1816_s15 = smov [#allocation5]  }
   0x6   : > { %p1916_p3 = pnand %p1445_p1, %p352_p2  ;;  %s394_s16 = sshll.u32 %s1816_s15, 4  ;;  %s395_s16 = int_to_ptr.vmem [resolvable:$true] %s394_s16 }
   0x7   : > { %s1773_s17 = scalar_lea.vmem %s395_s16, 128  ;;  %p1781_p11 = scmp.lt.s32.totalorder %s395_s16, %s395_s16 }
   0x8   : > { %p1681_p5 = pneg %p1916_p3  ;;  %p1774_p8 = scmp.ne.s32.totalorder %s395_s16, %s1773_s17 }
   0x9   : > { %p1782_p12 = scmp.lt.s32.totalorder %s1773_s17, %s1773_s17 }
   0xa   : > { %p1682_p6 = pnand %p1920_p4, %p1681_p5 }
   0xb   : > { %p1783_p13 = por %p1782_p12, %p1781_p11 }
   0xc   : > { %p1764_p7 = pneg %p1682_p6 }
   0xe   : > { %p1776_p9 = pnand %p1774_p8, %p1764_p7 }
  0x10   : > { %p1777_p10 = pneg %p1776_p9 }
  0x12   : > { %p1784_p0 = pnand %p1783_p13, %p1777_p10 }
  0x14   : > { %1787 = shalt.err (!%p1784_p0)
}
  0x15   : > { %s1817_s18 = smov 64   ;;  %s1818_s19 = smov 4  }
  0x16   : > { %1684 = dma.hbm_to_vmem [thread:$0]  (!%p1682_p6), %s2119_s9, 128, %s395_s16, [#allocation6], %s1817_s18, %s1817_s18, %s1818_s19  }
  0x17   : > { %431 = sbr.rel (%p1916_p3) target bundleno = 1580 (0x62c), region = 72 }
  0x1c   : > { %1801 = dma.done.wait (%p1920_p4), [#allocation6], 128  }
  0x1d   : > { %1803 = vsyncadd (%p1920_p4), [#allocation6], 4294967168  ;;  %p495_p1 = scmp.eq.s32.totalorder %s1806_s25, 0  ;;  %v1941_v0 = vld [vmem:[%s2111_s1] sm:$0x1] }
  0x1e   : > { %v1720_v1 = vld [vmem:[%s2112_s2] sm:$0xff] (%p495_p1)   ;;  %vm523_vm0 = vcmask (%p495_p1), 130048   ;;  %v1722_v3 = vld [vmem:[%s2113_s3 + $0x8] sm:$0xff] (%p495_p1)  }
  0x1f   : > { %500 = sbr.rel (!%p495_p1) target bundleno = 239 (0xef), region = 80  ;;  %v1721_v2 = vld [vmem:[%s2113_s3] sm:$0xff] (%p495_p1)   ;;  %1587 = vmatprep.subr.bf16.mxu0 (%p495_p1), %v1720_v1 }
  0x20   : > { %1588 = vmatpush3.bf16.msra.mxu0 (%p495_p1), %v1720_v1  ;;  %1589 = vmatprep.mubr.msk.bf16.mxu0 (%p495_p1), %vm523_vm0, %v1721_v2  ;;  %v1459_v5 = vld [vmem:[%s2110_s0] ss:$0 sm:$0xff] (%p495_p1) }
  0x23   : > { %1590 = vmatmul.mubr.msk.bf16.vlgmr.msra.gmra.mxu0 (%p495_p1), %vm523_vm0, %v1722_v3 }
  0xe3   : > { %v1591_v4 = vpop.f32.mrf.mxu0 }
  0xe4   : > { %v588_v8 = vmul.f32 %v1591_v4, %v1459_v5 }
  0xe5   : > { %v564_v6 = vpop.f32.mrf.mxu0 }
  0xe6   : > { %v586_v11 = vmul.f32 %v1459_v5, %v564_v6 }
  0xe7   : > { %v1592_v7 = vpop.f32.mrf.mxu0 }
  0xe8   : > { %v589_v9 = vmul.f32 %v1592_v7, %v1459_v5 }
  0xe9   : > { %v567_v10 = vpop.f32.mrf.mxu0 }
  0xea   : > { %v1529_v12 = vpack.c.bf16 %v589_v9, %v588_v8  ;;  %v587_v13 = vmul.f32 %v1459_v5, %v567_v10 }
  0xec   : > { %1541 = vst [vmem:[#allocation2 + $0x8] sm:$0xff] %v1529_v12   ;;  %v1524_v14 = vpack.c.bf16 %v587_v13, %v586_v11 }
  0xee   : > { %1525 = vst [vmem:[#allocation2] sm:$0xff] %v1524_v14  }
  0xef PF: > { %p1464_p2 = scmp.ne.s32.totalorder %s1806_s25, 0 }
  0xf1   : > { %612 = sbr.rel (%p1464_p2) target bundleno = 697 (0x2b9), region = 84 }
  0xf6   : > { %v1725_v15 = vld [vmem:[%s2121_s11 + $0x38] sm:$0xff]   ;;  %v1726_v16 = vld [vmem:[%s2121_s11 + $0x30] sm:$0xff]   ;;  %v1819_v17 = vmov 0   ;;  %v1727_v18 = vld [vmem:[%s2121_s11 + $0x28] sm:$0xff]   ;;  %vm800_vm1 = vcmask 261120   ;;  %v743_v31 = vlaneseq }
  0xf7   : > { %1723 = vset.pattern.permute.xlu0 %v1819_v17  ;;  %1724 = vset.pattern.permute.xlu1 %v1819_v17  ;;  %v1728_v19 = vld [vmem:[%s2121_s11 + $0x20] sm:$0xff]   ;;  %v754_v21 = vld [vmem:[%s2114_s4 + $0x10] sm:$0xff]  ;;  %v1729_v23 = vld [vmem:[%s2121_s11 + $0x18] sm:$0xff]  }
  0xf8   : > { %1593 = vmatprep.subr.bf16.mxu0 %v1725_v15  ;;  %v1733_v20 = vld [vmem:[#allocation2] sm:$0xff]   ;;  %768 = vperm.xlu0 %1723, %v754_v21   ;;  %v755_v24 = vld [vmem:[%s2114_s4 + $0x18] sm:$0xff]  ;;  %v753_v25 = vld [vmem:[%s2114_s4 + $0x8] sm:$0xff]  ;;  %v744_v32 = vshrl.u32 %v743_v31, 7 }
  0xf9   : > { %1594 = vmatpush3.bf16.msra.mxu0 %v1725_v15  ;;  %1609 = vmatprep.mubr.bf16.mxu0 %v1733_v20  ;;  %v752_v22 = vld [vmem:[%s2114_s4] sm:$0xff]  ;;  %v1730_v26 = vld [vmem:[%s2121_s11 + $0x10] sm:$0xff]   ;;  %v1731_v27 = vld [vmem:[%s2121_s11 + $0x8] sm:$0xff]  }
  0xfa   : > { %1595 = vmatprep.subr.bf16.mxu0 %v1726_v16  ;;  %758 = vperm.xlu1 %1724, %v752_v22   ;;  %v1732_v28 = vld [vmem:[%s2121_s11] sm:$0xff]   ;;  %v1734_v29 = vld [vmem:[#allocation2 + $0x8] sm:$0xff]   ;;  %v745_v33 = vsub.s32 0, %v744_v32 }
  0xfb   : > { %v1735_v30 = vld [vmem:[%s2115_s5] sm:$0xff]   ;;  %v1736_v57 = vld [vmem:[%s2115_s5 + $0x8] sm:$0xff]  }
  0xfc   : > { %773 = vperm.xlu0 %1723, %v755_v24   ;;  %1617 = vmatprep.mubr.msk.bf16.mxu1 %vm800_vm1, %v1735_v30  ;;  %v746_v34 = vrot.slane %v1941_v0, %v745_v33 }
  0xfd   : > { %1596 = vmatpush3.bf16.msra.mxu0 %v1726_v16 }
  0xfe   : > { %1597 = vmatprep.subr.bf16.mxu0 %v1727_v18  ;;  %763 = vperm.xlu1 %1724, %v753_v25  }
 0x101   : > { %1598 = vmatpush3.bf16.msra.mxu0 %v1727_v18 }
 0x102   : > { %1599 = vmatprep.subr.bf16.mxu0 %v1728_v19 }
 0x105   : > { %1600 = vmatpush3.bf16.msra.mxu0 %v1728_v19 }
 0x106   : > { %1601 = vmatprep.subr.bf16.mxu0 %v1729_v23 }
 0x109   : > { %1602 = vmatpush3.bf16.msra.mxu0 %v1729_v23 }
 0x10a   : > { %1603 = vmatprep.subr.bf16.mxu0 %v1730_v26 }
 0x10d   : > { %1604 = vmatpush3.bf16.msra.mxu0 %v1730_v26 }
 0x10e   : > { %1605 = vmatprep.subr.bf16.mxu0 %v1731_v27 }
 0x111   : > { %1606 = vmatpush3.bf16.msra.mxu0 %v1731_v27 }
 0x112   : > { %1607 = vmatprep.subr.bf16.mxu0 %v1732_v28 }
 0x115   : > { %1608 = vmatpush3.bf16.msra.mxu0 %v1732_v28 }
 0x118   : > { %1610 = vmatmul.mubr.bf16.vlgmr.msra.gmra.mxu0 %v1734_v29 }
 0x173   : > { %v769_v35 = vpop.permute.xlu0 %768 }
 0x175   : > { %v759_v38 = vpop.permute.xlu1 %758 }
 0x177   : > { %v774_v44 = vpop.permute.xlu0 %773 }
 0x179   : > { %v764_v49 = vpop.permute.xlu1 %763 }
 0x1d8   : > { %v1611_v36 = vpop.f32.mrf.mxu0 }
 0x1d9   : > { %v750_v37 = vmul.f32 %v1611_v36, %v746_v34 }
 0x1da   : > { %v727_v39 = vpop.f32.mrf.mxu0 }
 0x1db   : > { %v748_v40 = vmul.f32 %v746_v34, %v727_v39  ;;  %v778_v42 = vadd.f32 %v769_v35, %v750_v37 }
 0x1dc   : > { %v1612_v41 = vpop.f32.mrf.mxu0 }
 0x1dd   : > { %v751_v43 = vmul.f32 %v1612_v41, %v746_v34  ;;  %v776_v46 = vadd.f32 %v759_v38, %v748_v40  ;;  %v782_v50 = vmax.f32 %v778_v42, 0.0 }
 0x1de   : > { %v730_v45 = vpop.f32.mrf.mxu0 }
 0x1df   : > { %v779_v47 = vadd.f32 %v774_v44, %v751_v43  ;;  %v749_v48 = vmul.f32 %v746_v34, %v730_v45  ;;  %v780_v53 = vmax.f32 %v776_v46, 0.0 }
 0x1e1   : > { %v783_v51 = vmax.f32 %v779_v47, 0.0  ;;  %v777_v52 = vadd.f32 %v764_v49, %v749_v48 }
 0x1e3   : > { %v781_v54 = vmax.f32 %v777_v52, 0.0  ;;  %v789_v55 = vpack.c.bf16 %v783_v51, %v782_v50 }
 0x1e5   : > { %1613 = vmatprep.subr.bf16.mxu1 %v789_v55  ;;  %v788_v56 = vpack.c.bf16 %v781_v54, %v780_v53 }
 0x1e6   : > { %1614 = vmatpush3.bf16.msra.mxu1 %v789_v55 }
 0x1e7   : > { %1615 = vmatprep.subr.bf16.mxu1 %v788_v56 }
 0x1ea   : > { %1616 = vmatpush3.bf16.msra.mxu1 %v788_v56 }
 0x1ed   : > { %1618 = vmatmul.mubr.msk.bf16.vlgmr.msra.gmra.mxu1 %vm800_vm1, %v1736_v57 }
 0x2ad   : > { %v1619_v58 = vpop.f32.mrf.mxu1 }
 0x2ae   : > { %v858_v61 = vmul.f32 %v1619_v58, %v746_v34 }
 0x2af   : > { %v841_v59 = vpop.f32.mrf.mxu1 }
 0x2b0   : > { %v856_v1 = vmul.f32 %v841_v59, %v746_v34 }
 0x2b1   : > { %v1620_v60 = vpop.f32.mrf.mxu1 }
 0x2b2   : > { %v859_v62 = vmul.f32 %v1620_v60, %v746_v34 }
 0x2b3   : > { %v844_v63 = vpop.f32.mrf.mxu1 }
 0x2b4   : > { %v1539_v2 = vpack.c.bf16 %v859_v62, %v858_v61  ;;  %v857_v3 = vmul.f32 %v844_v63, %v746_v34 }
 0x2b6   : > { %1542 = vst [vmem:[#allocation3 + $0x8] sm:$0xff] %v1539_v2   ;;  %v1534_v4 = vpack.c.bf16 %v857_v3, %v856_v1 }
 0x2b8   : > { %1535 = vst [vmem:[#allocation3] sm:$0xff] %v1534_v4  }
 0x2b9 PF: > { %p883_p3 = scmp.eq.s32.totalorder %s1806_s25, 1 }
 0x2ba   : > { %v1820_v5 = vmov (%p883_p3), 0.0  }
 0x2bb   : > { %887 = sbr.rel (!%p883_p3) target bundleno = 704 (0x2c0), region = 88  ;;  %888 = vst [vmem:[#allocation4 + $0x10] sm:$0xff] (%p883_p3), %v1820_v5  ;;  %889 = vst [vmem:[#allocation4] sm:$0xff] (%p883_p3), %v1820_v5 }
 0x2bc   : > { %890 = vst [vmem:[#allocation4 + $0x18] sm:$0xff] (%p883_p3), %v1820_v5  ;;  %891 = vst [vmem:[#allocation4 + $0x8] sm:$0xff] (%p883_p3), %v1820_v5 }
 0x2c0 PF: > { %p1484_p4 = scmp.ne.s32.totalorder %s1806_s25, 1 }
 0x2c2   : > { %894 = sbr.rel (%p1484_p4) target bundleno = 1155 (0x483), region = 92 }
 0x2c7   : > { %v1739_v6 = vld [vmem:[%s2121_s11 + $0x38] sm:$0xff]   ;;  %v1740_v7 = vld [vmem:[%s2121_s11 + $0x30] sm:$0xff]   ;;  %v1821_v8 = vmov 0   ;;  %v1741_v9 = vld [vmem:[%s2121_s11 + $0x28] sm:$0xff]   ;;  %v1025_v29 = vlaneseq }
 0x2c8   : > { %1737 = vset.pattern.permute.xlu0 %v1821_v8  ;;  %1738 = vset.pattern.permute.xlu1 %v1821_v8  ;;  %v1742_v10 = vld [vmem:[%s2121_s11 + $0x20] sm:$0xff]   ;;  %v1747_v11 = vld [vmem:[#allocation3] sm:$0xff]   ;;  %v1743_v12 = vld [vmem:[%s2121_s11 + $0x18] sm:$0xff]  }
 0x2c9   : > { %1621 = vmatprep.subr.bf16.mxu0 %v1739_v6  ;;  %1637 = vmatprep.mubr.bf16.mxu0 %v1747_v11  ;;  %v1034_v13 = vld [vmem:[%s2116_s6] sm:$0xff]  ;;  %v1036_v14 = vld [vmem:[%s2116_s6 + $0x10] sm:$0xff]  ;;  %v1035_v15 = vld [vmem:[%s2116_s6 + $0x8] sm:$0xff]  ;;  %v1026_v30 = vshrl.u32 %v1025_v29, 7 }
 0x2ca   : > { %1622 = vmatpush3.bf16.msra.mxu0 %v1739_v6  ;;  %1040 = vperm.xlu0 %1737, %v1034_v13   ;;  %v1749_v16 = vld [vmem:[%s2122_s12 + $0x38] sm:$0xff]   ;;  %v1750_v18 = vld [vmem:[%s2122_s12 + $0x30] sm:$0xff]   ;;  %v1751_v20 = vld [vmem:[%s2122_s12 + $0x28] sm:$0xff]  }
 0x2cb   : > { %1623 = vmatprep.subr.bf16.mxu0 %v1740_v7  ;;  %1050 = vperm.xlu1 %1738, %v1036_v14   ;;  %v1037_v17 = vld [vmem:[%s2116_s6 + $0x18] sm:$0xff]  ;;  %v1744_v19 = vld [vmem:[%s2121_s11 + $0x10] sm:$0xff]   ;;  %v1745_v21 = vld [vmem:[%s2121_s11 + $0x8] sm:$0xff]   ;;  %v1027_v31 = vsub.s32 0, %v1026_v30 }
 0x2cc   : > { %1641 = vmatprep.subr.bf16.mxu1 %v1749_v16  ;;  %v1752_v22 = vld [vmem:[%s2122_s12 + $0x20] sm:$0xff]   ;;  %v1753_v24 = vld [vmem:[%s2122_s12 + $0x18] sm:$0xff]   ;;  %v1754_v26 = vld [vmem:[%s2122_s12 + $0x10] sm:$0xff]  }
 0x2cd   : > { %1642 = vmatpush3.bf16.msra.mxu1 %v1749_v16  ;;  %v1746_v23 = vld [vmem:[%s2121_s11] sm:$0xff]   ;;  %v1748_v25 = vld [vmem:[#allocation3 + $0x8] sm:$0xff]   ;;  %v1755_v27 = vld [vmem:[%s2122_s12 + $0x8] sm:$0xff]   ;;  %v1028_v34 = vrot.slane %v1941_v0, %v1027_v31 }
 0x2ce   : > { %1624 = vmatpush3.bf16.msra.mxu0 %v1740_v7  ;;  %1045 = vperm.xlu0 %1737, %v1035_v15   ;;  %v1756_v28 = vld [vmem:[%s2122_s12] sm:$0xff]   ;;  %v1068_v54 = vld [vmem:[#allocation4 + $0x18] sm:$0xff]  ;;  %v1066_v56 = vld [vmem:[#allocation4 + $0x10] sm:$0xff] }
 0x2cf   : > { %1625 = vmatprep.subr.bf16.mxu0 %v1741_v9  ;;  %1055 = vperm.xlu1 %1738, %v1037_v17   ;;  %v1069_v59 = vld [vmem:[#allocation4 + $0x8] sm:$0xff]  ;;  %v1067_v62 = vld [vmem:[#allocation4] sm:$0xff] }
 0x2d0   : > { %1643 = vmatprep.subr.bf16.mxu1 %v1750_v18 }
 0x2d1   : > { %1644 = vmatpush3.bf16.msra.mxu1 %v1750_v18 }
 0x2d2   : > { %1626 = vmatpush3.bf16.msra.mxu0 %v1741_v9  ;;  %1645 = vmatprep.subr.bf16.mxu1 %v1751_v20 }
 0x2d3   : > { %1627 = vmatprep.subr.bf16.mxu0 %v1742_v10 }
 0x2d5   : > { %1646 = vmatpush3.bf16.msra.mxu1 %v1751_v20 }
 0x2d6   : > { %1628 = vmatpush3.bf16.msra.mxu0 %v1742_v10  ;;  %1647 = vmatprep.subr.bf16.mxu1 %v1752_v22 }
 0x2d7   : > { %1629 = vmatprep.subr.bf16.mxu0 %v1743_v12 }
 0x2d9   : > { %1648 = vmatpush3.bf16.msra.mxu1 %v1752_v22 }
 0x2da   : > { %1630 = vmatpush3.bf16.msra.mxu0 %v1743_v12  ;;  %1649 = vmatprep.subr.bf16.mxu1 %v1753_v24 }
 0x2db   : > { %1631 = vmatprep.subr.bf16.mxu0 %v1744_v19 }
 0x2dd   : > { %1650 = vmatpush3.bf16.msra.mxu1 %v1753_v24 }
 0x2de   : > { %1632 = vmatpush3.bf16.msra.mxu0 %v1744_v19  ;;  %1651 = vmatprep.subr.bf16.mxu1 %v1754_v26 }
 0x2df   : > { %1633 = vmatprep.subr.bf16.mxu0 %v1745_v21 }
 0x2e1   : > { %1652 = vmatpush3.bf16.msra.mxu1 %v1754_v26 }
 0x2e2   : > { %1634 = vmatpush3.bf16.msra.mxu0 %v1745_v21  ;;  %1653 = vmatprep.subr.bf16.mxu1 %v1755_v27 }
 0x2e3   : > { %1635 = vmatprep.subr.bf16.mxu0 %v1746_v23 }
 0x2e5   : > { %1654 = vmatpush3.bf16.msra.mxu1 %v1755_v27 }
 0x2e6   : > { %1636 = vmatpush3.bf16.msra.mxu0 %v1746_v23  ;;  %1655 = vmatprep.subr.bf16.mxu1 %v1756_v28 }
 0x2e9   : > { %1638 = vmatmul.mubr.bf16.vlgmr.msra.gmra.mxu0 %v1748_v25  ;;  %1656 = vmatpush3.bf16.msra.mxu1 %v1756_v28 }
 0x345   : > { %v1041_v35 = vpop.permute.xlu0 %1040 }
 0x346   : > { %v1051_v32 = vpop.permute.xlu1 %1050 }
 0x349   : > { %v1046_v47 = vpop.permute.xlu0 %1045 }
 0x34a   : > { %v1056_v40 = vpop.permute.xlu1 %1055 }
 0x3a9   : > { %v1639_v33 = vpop.f32.mrf.mxu0 }
 0x3aa   : > { %v1032_v38 = vmul.f32 %v1639_v33, %v1028_v34 }
 0x3ab   : > { %v1009_v36 = vpop.f32.mrf.mxu0 }
 0x3ac   : > { %v1030_v37 = vmul.f32 %v1028_v34, %v1009_v36  ;;  %v1060_v46 = vadd.f32 %v1051_v32, %v1032_v38 }
 0x3ad   : > { %v1640_v39 = vpop.f32.mrf.mxu0 }
 0x3ae   : > { %v1033_v41 = vmul.f32 %v1640_v39, %v1028_v34  ;;  %v1058_v45 = vadd.f32 %v1041_v35, %v1030_v37  ;;  %v1064_v52 = vmax.f32 %v1060_v46, 0.0 }
 0x3af   : > { %v1012_v42 = vpop.f32.mrf.mxu0 }
 0x3b0   : > { %v1061_v43 = vadd.f32 %v1056_v40, %v1033_v41  ;;  %v1031_v44 = vmul.f32 %v1028_v34, %v1012_v42  ;;  %v1062_v50 = vmax.f32 %v1058_v45, 0.0 }
 0x3b2   : > { %v1059_v48 = vadd.f32 %v1046_v47, %v1031_v44  ;;  %v1065_v49 = vmax.f32 %v1061_v43, 0.0 }
 0x3b4   : > { %v1063_v51 = vmax.f32 %v1059_v48, 0.0  ;;  %v1071_v0 = vpack.c.bf16 %v1065_v49, %v1064_v52 }
 0x3b6   : > { %v1070_v53 = vpack.c.bf16 %v1063_v51, %v1062_v50 }
 0x3b8   : > { %1657 = vmatprep.mubr.bf16.mxu1 %v1070_v53 }
 0x3b9   : > { %1658 = vmatmul.mubr.bf16.vlgmr.msra.gmra.mxu1 %v1071_v0 }
 0x479   : > { %v1659_v55 = vpop.f32.mrf.mxu1 }
 0x47a   : > { %v1187_v57 = vadd.f32 %v1659_v55, %v1068_v54 }
 0x47b   : > { %v1170_v58 = vpop.f32.mrf.mxu1 }
 0x47c   : > { %1191 = vst [vmem:[#allocation4 + $0x18] sm:$0xff] %v1187_v57  ;;  %v1185_v60 = vadd.f32 %v1170_v58, %v1066_v56 }
 0x47d   : > { %v1660_v61 = vpop.f32.mrf.mxu1 }
 0x47e   : > { %1189 = vst [vmem:[#allocation4 + $0x10] sm:$0xff] %v1185_v60  ;;  %v1188_v63 = vadd.f32 %v1660_v61, %v1069_v59 }
 0x47f   : > { %v1173_v1 = vpop.f32.mrf.mxu1 }
 0x480   : > { %1192 = vst [vmem:[#allocation4 + $0x8] sm:$0xff] %v1188_v63  ;;  %v1186_v2 = vadd.f32 %v1173_v1, %v1067_v62 }
 0x482   : > { %1190 = vst [vmem:[#allocation4] sm:$0xff] %v1186_v2 }
 0x483 PF: > { %1194 = sbr.rel (!%p883_p3) target bundleno = 1580 (0x62c), region = 96  ;;  %v1201_v3 = vld [vmem:[#allocation4 + $0x18] sm:$0xff] (%p883_p3)  ;;  %vm1239_vm2 = vcmask (%p883_p3), 261120   ;;  %v1822_v8 = vmov (%p883_p3), 0   ;;  %v1759_v10 = vld [vmem:[%s2117_s7] sm:$0xff] (%p883_p3)   ;;  %v1207_v11 = vld [vmem:[%s2118_s8 + $0x10] sm:$0xff] (%p883_p3) }
 0x484   : > { %1757 = vset.pattern.permute.xlu0 (%p883_p3), %v1822_v8  ;;  %1758 = vset.pattern.permute.xlu1 (%p883_p3), %v1822_v8  ;;  %v1205_v12 = vld [vmem:[%s2118_s8] sm:$0xff] (%p883_p3)  ;;  %v1208_v13 = vld [vmem:[%s2118_s8 + $0x18] sm:$0xff] (%p883_p3)  ;;  %v1760_v14 = vld [vmem:[%s2117_s7 + $0x8] sm:$0xff] (%p883_p3)   ;;  %v1823_v18 = vmov (%p883_p3), 0.0   ;;  %vm1824_vm3 = vmmov (%p883_p3), 0  }
 0x485   : > { %v1199_v5 = vld [vmem:[#allocation4 + $0x10] sm:$0xff] (%p883_p3)  ;;  %1665 = vmatprep.mubr.msk.bf16.mxu0 (%p883_p3), %vm1239_vm2, %v1759_v10  ;;  %1221 = vperm.xlu0 (%p883_p3), %1757, %v1207_v11   ;;  %v1206_v15 = vld [vmem:[%s2118_s8 + $0x8] sm:$0xff] (%p883_p3)  ;;  %v1303_v16 = vld [vmem:[%s2120_s10] sm:$0xff] (%p883_p3) }
 0x486   : > { %1211 = vperm.xlu1 (%p883_p3), %1758, %v1205_v12   ;;  %v1304_v17 = vld [vmem:[%s2120_s10 + $0x8] sm:$0xff] (%p883_p3)  ;;  %1669 = vmatprep.subr.bf16.mxu1 (%p883_p3), %v1823_v18  ;;  %v1761_v37 = vld [vmem:[#allocation5] sm:$0xff] (%p883_p3)  }
 0x487   : > { %v1202_v4 = vld [vmem:[#allocation4 + $0x8] sm:$0xff] (%p883_p3)  ;;  %1673 = vmatprep.mubr.msk.bf16.mxu1 (%p883_p3), %vm1824_vm3, %v1823_v18 }
 0x488   : > { %v1204_v6 = vpack.c.bf16 %v1202_v4, %v1201_v3 }
 0x489   : > { %v1200_v7 = vld [vmem:[#allocation4] sm:$0xff]  ;;  %1226 = vperm.xlu0 %1757, %v1208_v13  }
 0x48a   : > { %v1203_v9 = vpack.c.bf16 %v1200_v7, %v1199_v5  ;;  %1661 = vmatprep.subr.bf16.mxu0 %v1204_v6  ;;  %1216 = vperm.xlu1 %1758, %v1206_v15  }
 0x48b   : > { %1662 = vmatpush3.bf16.msra.mxu0 %v1204_v6 }
 0x48c   : > { %1663 = vmatprep.subr.bf16.mxu0 %v1203_v9 }
 0x48d   : > { %1307 = vperm.xlu0 %1757, %v1303_v16  }
 0x48e   : > { %1312 = vperm.xlu1 %1758, %v1304_v17  }
 0x48f   : > { %1664 = vmatpush3.bf16.msra.mxu0 %v1203_v9 }
 0x492   : > { %1666 = vmatmul.mubr.msk.bf16.vlgmr.msra.gmra.mxu0 %vm1239_vm2, %v1760_v14 }
 0x500   : > { %v1222_v19 = vpop.permute.xlu0 %1221 }
 0x501   : > { %v1212_v20 = vpop.permute.xlu1 %1211 }
 0x504   : > { %v1227_v24 = vpop.permute.xlu0 %1226 }
 0x505   : > { %v1217_v27 = vpop.permute.xlu1 %1216 }
 0x508   : > { %v1308_v38 = vpop.permute.xlu0 %1307 }
 0x509   : > { %v1313_v42 = vpop.permute.xlu1 %1312 }
 0x552   : > { %v1667_v21 = vpop.f32.mrf.mxu0 }
 0x553   : > { %v1289_v23 = vadd.f32 %v1667_v21, %v1222_v19 }
 0x554   : > { %v1280_v22 = vpop.f32.mrf.mxu0 }
 0x555   : > { %v1297_v29 = vmax.f32 %v1289_v23, 0.0  ;;  %v1281_v30 = vadd.f32 %v1280_v22, %v1212_v20 }
 0x556   : > { %v1668_v25 = vpop.f32.mrf.mxu0 }
 0x557   : > { %v1292_v26 = vadd.f32 %v1668_v25, %v1227_v24  ;;  %v1295_v35 = vmax.f32 %v1281_v30, 0.0 }
 0x558   : > { %v1283_v28 = vpop.f32.mrf.mxu0 }
 0x559   : > { %v1298_v31 = vmax.f32 %v1292_v26, 0.0  ;;  %v1284_v32 = vadd.f32 %v1283_v28, %v1217_v27 }
 0x55b   : > { %v1296_v33 = vmax.f32 %v1284_v32, 0.0  ;;  %v1302_v34 = vpack.c.bf16 %v1298_v31, %v1297_v29 }
 0x55d   : > { %1670 = vmatpush3.bf16.msra.mxu1 %v1302_v34  ;;  %v1301_v36 = vpack.c.bf16 %v1296_v33, %v1295_v35 }
 0x55e   : > { %1671 = vmatprep.subr.bf16.mxu1 %v1823_v18 }
 0x561   : > { %1672 = vmatpush3.bf16.msra.mxu1 %v1301_v36 }
 0x564   : > { %1674 = vmatmul.mubr.msk.bf16.vlgmr.msra.gmra.mxu1 %vm1239_vm2, %v1761_v37 }
 0x624   : > { %v1357_v39 = vpop.f32.mrf.mxu1 }
 0x625   : > { %v1358_v40 = vadd.f32 %v1357_v39, %v1308_v38 }
 0x626   : > { %v1675_v41 = vpop.f32.mrf.mxu1 }
 0x627   : > { %1364 = vst [vmem:[%s2123_s13] sm:$0xff] %v1358_v40 }
 0x628   : > { %v1360_v43 = vpop.f32.mrf.mxu1 }
 0x629   : > { %v1361_v44 = vadd.f32 %v1360_v43, %v1313_v42 }
 0x62a   : > { %v1676_v45 = vpop.f32.mrf.mxu1 }
 0x62b   : > { %1365 = vst [vmem:[%s2123_s13 + $0x8] sm:$0xff] %v1361_v44 }
 0x62c PF: > { %s24_s27 = sadd.s32 1, %s1814_s27   ;;  %s2126_s25 = smov %s1810_s26 }
 0x62d   : > { %p21_p5 = scmp.ge.s32.totalorder %s24_s27, 4   ;;  %s2127_s26 = smov %s2129_s29 }
 0x62f   :  { %23 = sbr.rel (!%p21_p5) target bundleno = 2 (0x2), region = 130 }
 0x634   :  { %1377 = vsyncpa [#allocation6], 1 }
 0x635   :  { %1379 = vsyncpa [#allocation6 + $0x1], 1 }

</bundles_post_ra>
